<compile_context>
chip_gen: v5e
topology: v5e:2x2
jax: 0.10.0
libtpu: 0.0.40
codegen_flags: <defaults>
</compile_context>

<pallas_src>
import jax
import jax.numpy as jnp
import numpy as np
from jax.experimental import pallas as pl
from jax.experimental.pallas import tpu as pltpu


def ffn_kernel(x_ref, w1_ref, b1_ref, w2_ref, b2_ref, o_ref, acc_ref):
    # x_ref : (TM, dim)    row tile of flattened input (resident across the k axis)
    # w1_ref: (dim, TH)    column tile of W1^T
    # b1_ref: (1, TH)      matching slice of b1
    # w2_ref: (TH, dim)    row tile of W2^T
    # b2_ref: (1, dim)
    # o_ref : (TM, dim)
    # acc_ref: (TM, dim) f32 accumulator (VMEM scratch, persists across grid steps)
    kh = pl.program_id(1)

    @pl.when(kh == 0)
    def _init():
        acc_ref[...] = jnp.zeros_like(acc_ref)

    h = jnp.dot(x_ref[...].astype(w1_ref.dtype), w1_ref[...],
                preferred_element_type=jnp.float32)
    h = h + b1_ref[...].astype(jnp.float32)
    h = jnp.maximum(h, 0.0)                                  # ReLU (elementwise over hidden)
    acc_ref[...] += jnp.dot(h.astype(w2_ref.dtype), w2_ref[...],
                            preferred_element_type=jnp.float32)

    @pl.when(kh == pl.num_programs(1) - 1)
    def _finalize():
        o_ref[...] = (acc_ref[...] + b2_ref[...].astype(jnp.float32)).astype(o_ref.dtype)


def _round_up(n, m):
    return ((n + m - 1) // m) * m


def _vmem_capacity_bytes():
    try:
        return int(pltpu.get_tpu_info().vmem_capacity_bytes)
    except Exception:
        return 64 * 1024 * 1024  # conservative (v7x per-core VMEM)


def _select_tiles(M, dim, hidden, x_itemsize, w_itemsize, budget, block_rows):
    """Pick (TM, TH, single_buffer_weights) so the working set fits the VMEM budget."""
    if block_rows is None:
        block_rows = 1024 if budget >= 80 * 2**20 else 512

    if M <= block_rows:
        TM = _round_up(max(M, 1), 8)          # one (possibly partial) row block
    else:
        TM = _round_up(block_rows, 256)       # MXU-aligned row tile

    def fits(tm, th, wbufs):
        weights = 2 * dim * th * w_itemsize * wbufs      # W1^T tile + W2^T tile
        biases = (th + dim) * w_itemsize * wbufs
        io = 2 * (2 * tm * dim * x_itemsize)             # x + out tiles, double-buffered
        scratch = tm * th * 4 + tm * dim * 4             # h intermediate + f32 accumulator
        return weights + biases + io + scratch <= budget

    while True:
        # Preferred: fully-resident weights, single-buffered (constant index_maps).
        if fits(TM, hidden, 1):
            return TM, hidden, True
        # Otherwise stream the hidden dimension; TH must divide hidden (no ragged
        # hidden edge => no garbage accumulation) and be a multiple of 128.
        divisors = [d for d in range(128, hidden, 128) if hidden % d == 0]
        for th in sorted(divisors, reverse=True):
            if fits(TM, th, 2):
                return TM, th, False
        if TM > 256:
            TM = max(256, _round_up(TM // 2, 8))
            continue
        # Last resort: smallest legal tiles even if the estimate says it is tight.
        if divisors:
            return TM, min(divisors), False
        return TM, hidden, True


def _ffn_call(x2, w1t, b1r, w2t, b2r, *, TM, TH, single_buffer_weights,
              vmem_limit, cost):
    M, dim = x2.shape
    hidden = w1t.shape[1]
    grid = (pl.cdiv(M, TM), pl.cdiv(hidden, TH))

    def wspec(shape, imap):
        # Constant-index (resident) parameters: one buffer is enough.
        if single_buffer_weights:
            return pl.BlockSpec(shape, imap, pipeline_mode=pl.Buffered(1))
        return pl.BlockSpec(shape, imap)

    return pl.pallas_call(
        ffn_kernel,
        out_shape=jax.ShapeDtypeStruct((M, dim), x2.dtype),
        grid_spec=pltpu.PrefetchScalarGridSpec(
            num_scalar_prefetch=0,
            grid=grid,
            in_specs=[
                pl.BlockSpec((TM, dim), lambda i, k: (i, 0)),   # x row tile (resident over k)
                wspec((dim, TH), lambda i, k: (0, k)),          # W1^T column tile
                wspec((1, TH), lambda i, k: (0, k)),            # b1 slice
                wspec((TH, dim), lambda i, k: (k, 0)),          # W2^T row tile
                wspec((1, dim), lambda i, k: (0, 0)),           # b2 (resident)
            ],
            out_specs=pl.BlockSpec((TM, dim), lambda i, k: (i, 0)),  # lane-dense output
            scratch_shapes=[pltpu.VMEM((TM, dim), jnp.float32)],
        ),
        compiler_params=pltpu.CompilerParams(
            dimension_semantics=("parallel", "arbitrary"),
            vmem_limit_bytes=int(vmem_limit),
        ),
        cost_estimate=cost,
    )(x2, w1t, b1r, w2t, b2r)


def feedforward_forward(x, w1, b1, w2, b2, *, block_rows=None, param_dtype=None):
    """x: (..., dim). w1: (hidden, dim), b1: (hidden,), w2: (dim, hidden), b2: (dim,)."""
    hidden, dim = w1.shape
    assert w2.shape == (dim, hidden), "FeedForward is dim -> hidden -> dim"
    assert b1.shape == (hidden,) and b2.shape == (dim,)

    lead = x.shape[:-1]
    x2 = x.reshape(-1, dim)
    M = x2.shape[0]

    # Parameter-only prep, once per call (outside the kernel hot loop).
    w_dtype = jnp.dtype(param_dtype) if param_dtype is not None else jnp.asarray(w1).dtype
    w1t = jnp.asarray(w1).T.astype(w_dtype)      # (dim, hidden)
    w2t = jnp.asarray(w2).T.astype(w_dtype)      # (hidden, dim)
    b1r = jnp.asarray(b1).reshape(1, hidden)
    b2r = jnp.asarray(b2).reshape(1, dim)

    vmem_cap = _vmem_capacity_bytes()
    budget = int(vmem_cap * 0.8)                 # ~20% headroom for compiler scratch

    TM, TH, single_w = _select_tiles(
        M, dim, hidden, x2.dtype.itemsize, jnp.dtype(w_dtype).itemsize, budget, block_rows)

    cost = pl.CostEstimate(
        flops=int(4 * M * dim * hidden),
        transcendentals=0,
        bytes_accessed=int(2 * M * dim * x2.dtype.itemsize
                           + (w1t.size + w2t.size) * jnp.dtype(w_dtype).itemsize
                           + (b1r.size + b2r.size) * b1r.dtype.itemsize),
    )

    try:
        out = _ffn_call(x2, w1t, b1r, w2t, b2r, TM=TM, TH=TH,
                        single_buffer_weights=single_w, vmem_limit=budget, cost=cost)
    except Exception:
        if not single_w:
            raise
        # Fallback if this JAX build rejects single-buffered (Buffered(1)) specs.
        out = _ffn_call(x2, w1t, b1r, w2t, b2r, TM=TM, TH=TH,
                        single_buffer_weights=False, vmem_limit=budget, cost=cost)

    return out.reshape(lead + (dim,))


def feedforward_reference(x, w1, b1, w2, b2):
    h = jnp.maximum(x @ w1.T + b1, 0.0)
    return h @ w2.T + b2


if __name__ == "__main__":
    # Small shapes consistent with the module: x: (batch, seq, dim), hidden_dim.
    bs, seq, dim, hidden = 2, 16, 32, 64

    key = jax.random.PRNGKey(0)
    kx, kw1, kb1, kw2, kb2 = jax.random.split(key, 5)

    x = jax.random.normal(kx, (bs, seq, dim), dtype=jnp.float32)

    # torch.nn.Linear layout: weight (out_features, in_features), bias (out_features,)
    w1 = 0.1 * jax.random.normal(kw1, (hidden, dim), dtype=jnp.float32)
    b1 = 0.1 * jax.random.normal(kb1, (hidden,), dtype=jnp.float32)
    w2 = 0.1 * jax.random.normal(kw2, (dim, hidden), dtype=jnp.float32)
    b2 = 0.1 * jax.random.normal(kb2, (dim,), dtype=jnp.float32)

    out = jax.block_until_ready(feedforward_forward(x, w1, b1, w2, b2))
    ref = feedforward_reference(x, w1, b1, w2, b2)
    assert out.shape == (bs, seq, dim), out.shape
    np.testing.assert_allclose(np.asarray(out), np.asarray(ref), rtol=1e-5, atol=1e-5)

    # Ragged row count (M not a multiple of the row tile) exercises the no-pad,
    # masked-partial-block path introduced by the review.
    x_odd = jax.random.normal(kx, (3, 5, dim), dtype=jnp.float32)
    out_odd = jax.block_until_ready(feedforward_forward(x_odd, w1, b1, w2, b2))
    ref_odd = feedforward_reference(x_odd, w1, b1, w2, b2)
    np.testing.assert_allclose(np.asarray(out_odd), np.asarray(ref_odd), rtol=1e-5, atol=1e-5)

    print("KERNEL_OK")
</pallas_src>

<mosaic_0001>
module attributes {stable_mosaic.version = 11 : i64} {
  func.func @ffn_kernel(%arg0: i32, %arg1: i32, %arg2: memref<32x32xf32, #tpu.memory_space<vmem>>, %arg3: memref<32x64xf32, #tpu.memory_space<vmem>>, %arg4: memref<1x64xf32, #tpu.memory_space<vmem>>, %arg5: memref<64x32xf32, #tpu.memory_space<vmem>>, %arg6: memref<1x32xf32, #tpu.memory_space<vmem>>, %arg7: memref<32x32xf32, #tpu.memory_space<vmem>>, %arg8: memref<32x32xf32, #tpu.memory_space<vmem>>) attributes {dimension_semantics = [#tpu.dimension_semantics<parallel>, #tpu.dimension_semantics<arbitrary>], iteration_bounds = array<i64: 1, 1>, scalar_prefetch = 0 : i64, scratch_operands = 1 : i64, tpu.core_type = #tpu.core_type<tc>, window_params = [{transform_indices = @transform_0, window_bounds = array<i64: 32, 32>}, {pipeline_mode = #tpu.pipeline_mode<synchronous>, transform_indices = @transform_1, window_bounds = array<i64: 32, 64>}, {pipeline_mode = #tpu.pipeline_mode<synchronous>, transform_indices = @transform_2, window_bounds = array<i64: 1, 64>}, {pipeline_mode = #tpu.pipeline_mode<synchronous>, transform_indices = @transform_3, window_bounds = array<i64: 64, 32>}, {pipeline_mode = #tpu.pipeline_mode<synchronous>, transform_indices = @transform_4, window_bounds = array<i64: 1, 32>}, {transform_indices = @transform_5, window_bounds = array<i64: 32, 32>}]} {
    %c0_i32 = arith.constant 0 : i32
    %0 = arith.cmpi eq, %arg1, %c0_i32 : i32
    %1 = arith.extui %0 : i1 to i32
    %c0_i32_0 = arith.constant 0 : i32
    %2 = arith.cmpi ne, %1, %c0_i32_0 : i32
    scf.if %2 {
      %cst_16 = arith.constant 0.000000e+00 : f32
      %19 = vector.broadcast %cst_16 : f32 to vector<32x32xf32>
      %c0_17 = arith.constant 0 : index
      %c0_18 = arith.constant 0 : index
      %20 = vector.load %arg8[%c0_17, %c0_18] : memref<32x32xf32, #tpu.memory_space<vmem>>, vector<32x32xf32>
      tpu.vector_store %arg8[%c0_17, %c0_18], %19 {strides = array<i32>} : memref<32x32xf32, #tpu.memory_space<vmem>>, vector<32x32xf32>,
    } else {
    }
    %c0 = arith.constant 0 : index
    %c0_1 = arith.constant 0 : index
    %3 = vector.load %arg2[%c0, %c0_1] : memref<32x32xf32, #tpu.memory_space<vmem>>, vector<32x32xf32>
    %c0_2 = arith.constant 0 : index
    %c0_3 = arith.constant 0 : index
    %4 = vector.load %arg3[%c0_2, %c0_3] : memref<32x64xf32, #tpu.memory_space<vmem>>, vector<32x64xf32>
    %cst = arith.constant dense<0.000000e+00> : vector<32x64xf32>
    %5 = tpu.matmul %3, %4, %cst {dimension_numbers = #tpu.dot_dimension_numbers<[1], [0], [0], [1], [0, 0, 1, 1], [], []>} : vector<32x32xf32>, vector<32x64xf32>, vector<32x64xf32> -> vector<32x64xf32>
    %c0_4 = arith.constant 0 : index
    %c0_5 = arith.constant 0 : index
    %6 = vector.load %arg4[%c0_4, %c0_5] : memref<1x64xf32, #tpu.memory_space<vmem>>, vector<1x64xf32>
    %7 = vector.broadcast %6 : vector<1x64xf32> to vector<32x64xf32>
    %8 = arith.addf %5, %7 : vector<32x64xf32>
    %cst_6 = arith.constant 0.000000e+00 : f32
    %9 = vector.broadcast %cst_6 : f32 to vector<32x64xf32>
    %10 = arith.maximumf %8, %9 : vector<32x64xf32>
    %c0_7 = arith.constant 0 : index
    %c0_8 = arith.constant 0 : index
    %11 = vector.load %arg8[%c0_7, %c0_8] : memref<32x32xf32, #tpu.memory_space<vmem>>, vector<32x32xf32>
    %c0_9 = arith.constant 0 : index
    %c0_10 = arith.constant 0 : index
    %12 = vector.load %arg5[%c0_9, %c0_10] : memref<64x32xf32, #tpu.memory_space<vmem>>, vector<64x32xf32>
    %cst_11 = arith.constant dense<0.000000e+00> : vector<32x32xf32>
    %13 = tpu.matmul %10, %12, %cst_11 {dimension_numbers = #tpu.dot_dimension_numbers<[1], [0], [0], [1], [0, 0, 1, 1], [], []>} : vector<32x64xf32>, vector<64x32xf32>, vector<32x32xf32> -> vector<32x32xf32>
    %14 = arith.addf %11, %13 : vector<32x32xf32>
    %c0_12 = arith.constant 0 : index
    %c0_13 = arith.constant 0 : index
    %15 = vector.load %arg8[%c0_12, %c0_13] : memref<32x32xf32, #tpu.memory_space<vmem>>, vector<32x32xf32>
    tpu.vector_store %arg8[%c0_12, %c0_13], %14 {strides = array<i32>} : memref<32x32xf32, #tpu.memory_space<vmem>>, vector<32x32xf32>,
    %c0_i32_14 = arith.constant 0 : i32
    %16 = arith.cmpi eq, %arg1, %c0_i32_14 : i32
    %17 = arith.extui %16 : i1 to i32
    %c0_i32_15 = arith.constant 0 : i32
    %18 = arith.cmpi ne, %17, %c0_i32_15 : i32
    scf.if %18 {
      %c0_16 = arith.constant 0 : index
      %c0_17 = arith.constant 0 : index
      %19 = vector.load %arg8[%c0_16, %c0_17] : memref<32x32xf32, #tpu.memory_space<vmem>>, vector<32x32xf32>
      %c0_18 = arith.constant 0 : index
      %c0_19 = arith.constant 0 : index
      %20 = vector.load %arg6[%c0_18, %c0_19] : memref<1x32xf32, #tpu.memory_space<vmem>>, vector<1x32xf32>
      %21 = vector.broadcast %20 : vector<1x32xf32> to vector<32x32xf32>
      %22 = arith.addf %19, %21 : vector<32x32xf32>
      %c0_20 = arith.constant 0 : index
      %c0_21 = arith.constant 0 : index
      %23 = vector.load %arg7[%c0_20, %c0_21] : memref<32x32xf32, #tpu.memory_space<vmem>>, vector<32x32xf32>
      tpu.vector_store %arg7[%c0_20, %c0_21], %22 {strides = array<i32>} : memref<32x32xf32, #tpu.memory_space<vmem>>, vector<32x32xf32>,
    } else {
    }
    return
  }
  func.func @transform_0(%arg0: i32, %arg1: i32) -> (i32, i32) {
    %c0_i32 = arith.constant 0 : i32
    %c0_i32_0 = arith.constant 0 : i32
    return %arg0, %c0_i32 : i32, i32
  }
  func.func @transform_1(%arg0: i32, %arg1: i32) -> (i32, i32) {
    %c0_i32 = arith.constant 0 : i32
    %c0_i32_0 = arith.constant 0 : i32
    return %c0_i32, %arg1 : i32, i32
  }
  func.func @transform_2(%arg0: i32, %arg1: i32) -> (i32, i32) {
    %c0_i32 = arith.constant 0 : i32
    %c0_i32_0 = arith.constant 0 : i32
    return %c0_i32, %arg1 : i32, i32
  }
  func.func @transform_3(%arg0: i32, %arg1: i32) -> (i32, i32) {
    %c0_i32 = arith.constant 0 : i32
    %c0_i32_0 = arith.constant 0 : i32
    return %arg1, %c0_i32 : i32, i32
  }
  func.func @transform_4(%arg0: i32, %arg1: i32) -> (i32, i32) {
    %c0_i32 = arith.constant 0 : i32
    %c0_i32_0 = arith.constant 0 : i32
    %c0_i32_1 = arith.constant 0 : i32
    return %c0_i32, %c0_i32_0 : i32, i32
  }
  func.func @transform_5(%arg0: i32, %arg1: i32) -> (i32, i32) {
    %c0_i32 = arith.constant 0 : i32
    %c0_i32_0 = arith.constant 0 : i32
    return %arg0, %c0_i32 : i32, i32
  }
}

module attributes {stable_mosaic.version = 11 : i64} {
  func.func @ffn_kernel(%arg0: i32, %arg1: i32, %arg2: memref<32x32xf32, #tpu.memory_space<vmem>>, %arg3: memref<32x64xf32, #tpu.memory_space<vmem>>, %arg4: memref<1x64xf32, #tpu.memory_space<vmem>>, %arg5: memref<64x32xf32, #tpu.memory_space<vmem>>, %arg6: memref<1x32xf32, #tpu.memory_space<vmem>>, %arg7: memref<32x32xf32, #tpu.memory_space<vmem>>, %arg8: memref<32x32xf32, #tpu.memory_space<vmem>>) attributes {dimension_semantics = [#tpu.dimension_semantics<parallel>, #tpu.dimension_semantics<arbitrary>], iteration_bounds = array<i64: 1, 1>, scalar_prefetch = 0 : i64, scratch_operands = 1 : i64, tpu.core_type = #tpu.core_type<tc>, window_params = [{transform_indices = @transform_0, window_bounds = array<i64: 32, 32>}, {transform_indices = @transform_1, window_bounds = array<i64: 32, 64>}, {transform_indices = @transform_2, window_bounds = array<i64: 1, 64>}, {transform_indices = @transform_3, window_bounds = array<i64: 64, 32>}, {pipeline_mode = #tpu.pipeline_mode<synchronous>, transform_indices = @transform_4, window_bounds = array<i64: 1, 32>}, {transform_indices = @transform_5, window_bounds = array<i64: 32, 32>}]} {
    %c0_i32 = arith.constant 0 : i32
    %0 = arith.cmpi eq, %arg1, %c0_i32 : i32
    %1 = arith.extui %0 : i1 to i32
    %c0_i32_0 = arith.constant 0 : i32
    %2 = arith.cmpi ne, %1, %c0_i32_0 : i32
    scf.if %2 {
      %cst_16 = arith.constant 0.000000e+00 : f32
      %19 = vector.broadcast %cst_16 : f32 to vector<32x32xf32>
      %c0_17 = arith.constant 0 : index
      %c0_18 = arith.constant 0 : index
      %20 = vector.load %arg8[%c0_17, %c0_18] : memref<32x32xf32, #tpu.memory_space<vmem>>, vector<32x32xf32>
      tpu.vector_store %arg8[%c0_17, %c0_18], %19 {strides = array<i32>} : memref<32x32xf32, #tpu.memory_space<vmem>>, vector<32x32xf32>,
    } else {
    }
    %c0 = arith.constant 0 : index
    %c0_1 = arith.constant 0 : index
    %3 = vector.load %arg2[%c0, %c0_1] : memref<32x32xf32, #tpu.memory_space<vmem>>, vector<32x32xf32>
    %c0_2 = arith.constant 0 : index
    %c0_3 = arith.constant 0 : index
    %4 = vector.load %arg3[%c0_2, %c0_3] : memref<32x64xf32, #tpu.memory_space<vmem>>, vector<32x64xf32>
    %cst = arith.constant dense<0.000000e+00> : vector<32x64xf32>
    %5 = tpu.matmul %3, %4, %cst {dimension_numbers = #tpu.dot_dimension_numbers<[1], [0], [0], [1], [0, 0, 1, 1], [], []>} : vector<32x32xf32>, vector<32x64xf32>, vector<32x64xf32> -> vector<32x64xf32>
    %c0_4 = arith.constant 0 : index
    %c0_5 = arith.constant 0 : index
    %6 = vector.load %arg4[%c0_4, %c0_5] : memref<1x64xf32, #tpu.memory_space<vmem>>, vector<1x64xf32>
    %7 = vector.broadcast %6 : vector<1x64xf32> to vector<32x64xf32>
    %8 = arith.addf %5, %7 : vector<32x64xf32>
    %cst_6 = arith.constant 0.000000e+00 : f32
    %9 = vector.broadcast %cst_6 : f32 to vector<32x64xf32>
    %10 = arith.maximumf %8, %9 : vector<32x64xf32>
    %c0_7 = arith.constant 0 : index
    %c0_8 = arith.constant 0 : index
    %11 = vector.load %arg8[%c0_7, %c0_8] : memref<32x32xf32, #tpu.memory_space<vmem>>, vector<32x32xf32>
    %c0_9 = arith.constant 0 : index
    %c0_10 = arith.constant 0 : index
    %12 = vector.load %arg5[%c0_9, %c0_10] : memref<64x32xf32, #tpu.memory_space<vmem>>, vector<64x32xf32>
    %cst_11 = arith.constant dense<0.000000e+00> : vector<32x32xf32>
    %13 = tpu.matmul %10, %12, %cst_11 {dimension_numbers = #tpu.dot_dimension_numbers<[1], [0], [0], [1], [0, 0, 1, 1], [], []>} : vector<32x64xf32>, vector<64x32xf32>, vector<32x32xf32> -> vector<32x32xf32>
    %14 = arith.addf %11, %13 : vector<32x32xf32>
    %c0_12 = arith.constant 0 : index
    %c0_13 = arith.constant 0 : index
    %15 = vector.load %arg8[%c0_12, %c0_13] : memref<32x32xf32, #tpu.memory_space<vmem>>, vector<32x32xf32>
    tpu.vector_store %arg8[%c0_12, %c0_13], %14 {strides = array<i32>} : memref<32x32xf32, #tpu.memory_space<vmem>>, vector<32x32xf32>,
    %c0_i32_14 = arith.constant 0 : i32
    %16 = arith.cmpi eq, %arg1, %c0_i32_14 : i32
    %17 = arith.extui %16 : i1 to i32
    %c0_i32_15 = arith.constant 0 : i32
    %18 = arith.cmpi ne, %17, %c0_i32_15 : i32
    scf.if %18 {
      %c0_16 = arith.constant 0 : index
      %c0_17 = arith.constant 0 : index
      %19 = vector.load %arg8[%c0_16, %c0_17] : memref<32x32xf32, #tpu.memory_space<vmem>>, vector<32x32xf32>
      %c0_18 = arith.constant 0 : index
      %c0_19 = arith.constant 0 : index
      %20 = vector.load %arg6[%c0_18, %c0_19] : memref<1x32xf32, #tpu.memory_space<vmem>>, vector<1x32xf32>
      %21 = vector.broadcast %20 : vector<1x32xf32> to vector<32x32xf32>
      %22 = arith.addf %19, %21 : vector<32x32xf32>
      %c0_20 = arith.constant 0 : index
      %c0_21 = arith.constant 0 : index
      %23 = vector.load %arg7[%c0_20, %c0_21] : memref<32x32xf32, #tpu.memory_space<vmem>>, vector<32x32xf32>
      tpu.vector_store %arg7[%c0_20, %c0_21], %22 {strides = array<i32>} : memref<32x32xf32, #tpu.memory_space<vmem>>, vector<32x32xf32>,
    } else {
    }
    return
  }
  func.func @transform_0(%arg0: i32, %arg1: i32) -> (i32, i32) {
    %c0_i32 = arith.constant 0 : i32
    %c0_i32_0 = arith.constant 0 : i32
    return %arg0, %c0_i32 : i32, i32
  }
  func.func @transform_1(%arg0: i32, %arg1: i32) -> (i32, i32) {
    %c0_i32 = arith.constant 0 : i32
    %c0_i32_0 = arith.constant 0 : i32
    return %c0_i32, %arg1 : i32, i32
  }
  func.func @transform_2(%arg0: i32, %arg1: i32) -> (i32, i32) {
    %c0_i32 = arith.constant 0 : i32
    %c0_i32_0 = arith.constant 0 : i32
    return %c0_i32, %arg1 : i32, i32
  }
  func.func @transform_3(%arg0: i32, %arg1: i32) -> (i32, i32) {
    %c0_i32 = arith.constant 0 : i32
    %c0_i32_0 = arith.constant 0 : i32
    return %arg1, %c0_i32 : i32, i32
  }
  func.func @transform_4(%arg0: i32, %arg1: i32) -> (i32, i32) {
    %c0_i32 = arith.constant 0 : i32
    %c0_i32_0 = arith.constant 0 : i32
    %c0_i32_1 = arith.constant 0 : i32
    return %c0_i32, %c0_i32_0 : i32, i32
  }
  func.func @transform_5(%arg0: i32, %arg1: i32) -> (i32, i32) {
    %c0_i32 = arith.constant 0 : i32
    %c0_i32_0 = arith.constant 0 : i32
    return %arg0, %c0_i32 : i32, i32
  }
}

</mosaic_0001>

<bundles_post_ra>
// kernel: tpu_custom_call.1
= control target key start
LH: loop header
LB: loop body
LE: loop exit
PB: predicated region body
PF: predicated region fallthrough
CT: control target
= control target key end

     0   :  { %vm25_vm0 = vcmask 261120   ;;  %s346_s0 = inlined_call_operand.vmem [shape: f32[32,32], index: 0, kind: input, shape index: {}]   ;;  %s347_s1 = inlined_call_operand.vmem [shape: f32[32,64], index: 1, kind: input, shape index: {}]   ;;  %s348_s2 = inlined_call_operand.vmem [shape: f32[1,64], index: 2, kind: input, shape index: {}]   ;;  %s349_s3 = inlined_call_operand.vmem [shape: f32[64,32], index: 3, kind: input, shape index: {}]   ;;  %s350_s4 = inlined_call_operand.vmem [shape: f32[1,32], index: 4, kind: input, shape index: {}]   ;;  %s351_s5 = inlined_call_operand.hbm [shape: f32[32,32], index: 5, kind: output, shape index: {}]  }
   0x1   :  { %v37_v0 = vld [vmem:[%s347_s1 + $0x18] sm:$0xff]  ;;  %v36_v1 = vld [vmem:[%s347_s1 + $0x10] sm:$0xff]  ;;  %v35_v2 = vld [vmem:[%s347_s1 + $0x8] sm:$0xff] }
   0x2   :  { %67 = vmatpush.msra.mxu0 %v37_v0  ;;  %195 = vmatpush.msra.mxu3 %v37_v0  ;;  %v99_v3 = vld [vmem:[%s349_s3 + $0x38] sm:$0xff]  ;;  %v98_v4 = vld [vmem:[%s349_s3 + $0x30] sm:$0xff]  ;;  %v34_v5 = vld [vmem:[%s347_s1] sm:$0xff] }
   0x3   :  { %v30_v6 = vld [vmem:[%s346_s0] sm:$0xff]  ;;  %121 = vmatpush.msra.mxu1 %v99_v3  ;;  %199 = vmatpush.msra.mxu2 %v99_v3  ;;  %v31_v7 = vld [vmem:[%s346_s0 + $0x8] sm:$0xff] }
   0x4   :  { %68 = vmatpush.msra.mxu0 %v36_v1  ;;  %196 = vmatpush.msra.mxu3 %v36_v1 }
   0x6   :  { %69 = vmatpush.msra.mxu0 %v35_v2  ;;  %197 = vmatpush.msra.mxu3 %v35_v2 }
   0x7   :  { %10 = vsyncpa [#allocation4], 0  ;;  %122 = vmatpush.msra.mxu1 %v98_v4  ;;  %v97_v8 = vld [vmem:[%s349_s3 + $0x28] sm:$0xff]  ;;  %200 = vmatpush.msra.mxu2 %v98_v4  ;;  %v96_v9 = vld [vmem:[%s349_s3 + $0x20] sm:$0xff]  ;;  %v239_v16 = vmov 0.0   ;;  %vm100_vm1 = vcmask 523264  }
   0x8   :  { %70 = vmatpush.msra.mxu0 %v34_v5  ;;  %198 = vmatpush.msra.mxu3 %v34_v5  ;;  %v95_v10 = vld [vmem:[%s349_s3 + $0x18] sm:$0xff]  ;;  %v32_v11 = vld [vmem:[%s346_s0 + $0x10] sm:$0xff]  ;;  %v93_v14 = vld [vmem:[%s349_s3 + $0x8] sm:$0xff]  ;;  %26 = vst.msk [vmem:[#allocation2] sm:$0xff] %vm25_vm0, %v239_v16  ;;  %s175_s28 = sshll.u32 %s351_s5, 4  ;;  %s241_s29 = smov 128   ;;  %s176_s28 = int_to_ptr.hbm [resolvable:$true] %s175_s28 }
   0x9   :  { %187 = vmatmul.msk.f32.vlgmr.msra.gmra.mxu0 %vm25_vm0, %v30_v6  ;;  %188 = vmatmul.msk.f32.vlgmr.msra.gmra.mxu3 %vm25_vm0, %v31_v7  ;;  %v33_v12 = vld [vmem:[%s346_s0 + $0x18] sm:$0xff]  ;;  %v94_v13 = vld [vmem:[%s349_s3 + $0x10] sm:$0xff]  ;;  %v92_v15 = vld [vmem:[%s349_s3] sm:$0xff]  ;;  %27 = vst.msk [vmem:[#allocation2 + $0x8] sm:$0xff] %vm25_vm0, %v239_v16  ;;  %s242_s30 = smov 8  }
   0xa   :  { %123 = vmatpush.msra.mxu1 %v97_v8  ;;  %201 = vmatpush.msra.mxu2 %v97_v8  ;;  %v211_v17 = vld [vmem:[%s348_s2] ss:$0 sm:$0xff]  ;;  %28 = vst.msk [vmem:[#allocation2 + $0x10] sm:$0xff] %vm25_vm0, %v239_v16 }
   0xb   :  { %29 = vst.msk [vmem:[#allocation2 + $0x18] sm:$0xff] %vm25_vm0, %v239_v16  ;;  %v212_v36 = vld [vmem:[%s350_s4] ss:$0 sm:$0xff]  ;;  %s240_s4 = smov [#allocation3]  }
   0xc   :  { %124 = vmatpush.msra.mxu1 %v96_v9  ;;  %202 = vmatpush.msra.mxu2 %v96_v9  ;;  %s173_s25 = sshll.u32 %s240_s4, 4  ;;  %s174_s25 = int_to_ptr.vmem [resolvable:$true] %s173_s25 }
   0xe   :  { %125 = vmatpush.msra.mxu1 %v95_v10  ;;  %203 = vmatpush.msra.mxu2 %v95_v10 }
   0xf   :  { %v88_v30 = vld [vmem:[#allocation2] sm:$0xff] }
  0x10   :  { %126 = vmatpush.msra.mxu1 %v94_v13  ;;  %204 = vmatpush.msra.mxu2 %v94_v13  ;;  %v89_v33 = vld [vmem:[#allocation2 + $0x8] sm:$0xff] }
  0x11   :  { %189 = vmatmul.msk.f32.gmra.mxu3 %vm25_vm0, %v32_v11  ;;  %v90_v39 = vld [vmem:[#allocation2 + $0x10] sm:$0xff] }
  0x12   :  { %127 = vmatpush.msra.mxu1 %v93_v14  ;;  %205 = vmatpush.msra.mxu2 %v93_v14  ;;  %v91_v44 = vld [vmem:[#allocation2 + $0x18] sm:$0xff] }
  0x14   :  { %128 = vmatpush.msra.mxu1 %v92_v15  ;;  %206 = vmatpush.msra.mxu2 %v92_v15 }
  0x19   :  { %190 = vmatmul.msk.f32.gmra.mxu3 %vm25_vm0, %v33_v12 }
  0x86   :  { %v72_v18 = vpop.f32.mrf.mxu0 }
  0x87   :  { %v73_v19 = vadd.f32 %v211_v17, %v72_v18 }
  0x89   :  { %v84_v20 = vmax.f32 %v73_v19, 0.0 }
  0x8b   :  { %191 = vmatmul.msk.f32.vlgmr.msra.gmra.mxu1 %vm100_vm1, %v84_v20 }
  0x8c   :  { %v75_v21 = vpop.f32.mrf.mxu3 }
  0x8d   :  { %v76_v22 = vadd.f32 %v211_v17, %v75_v21 }
  0x8f   :  { %v85_v23 = vmax.f32 %v76_v22, 0.0 }
  0x93   :  { %192 = vmatmul.msk.f32.gmra.mxu1 %vm100_vm1, %v85_v23 }
  0x94   :  { %v78_v24 = vpop.f32.mrf.mxu3 }
  0x95   :  { %v79_v25 = vadd.f32 %v211_v17, %v78_v24 }
  0x97   :  { %v86_v26 = vmax.f32 %v79_v25, 0.0 }
  0x99   :  { %193 = vmatmul.msk.f32.vlgmr.msra.gmra.mxu2 %vm100_vm1, %v86_v26 }
  0x9c   :  { %v81_v27 = vpop.f32.mrf.mxu3 }
  0x9d   :  { %v82_v28 = vadd.f32 %v211_v17, %v81_v27 }
  0x9f   :  { %v87_v29 = vmax.f32 %v82_v28, 0.0 }
  0xa1   :  { %194 = vmatmul.msk.f32.gmra.mxu2 %vm100_vm1, %v87_v29 }
 0x108   :  { %v130_v31 = vpop.f32.mrf.mxu1 }
 0x109   :  { %v142_v32 = vadd.f32 %v130_v31, %v88_v30 }
 0x10b   :  { %146 = vst.msk [vmem:[#allocation2] sm:$0xff] %vm25_vm0, %v142_v32 }
 0x110   :  { %v133_v34 = vpop.f32.mrf.mxu1 }
 0x111   :  { %v143_v35 = vadd.f32 %v133_v34, %v89_v33 }
 0x112   :  { %v153_v37 = vld [vmem:[#allocation2] sm:$0xff] }
 0x113   :  { %147 = vst.msk [vmem:[#allocation2 + $0x8] sm:$0xff] %vm25_vm0, %v143_v35  ;;  %v161_v38 = vadd.f32 %v212_v36, %v153_v37 }
 0x115   :  { %165 = vst.msk [vmem:[#allocation3] sm:$0xff] %vm25_vm0, %v161_v38 }
 0x11a   :  { %v154_v40 = vld [vmem:[#allocation2 + $0x8] sm:$0xff] }
 0x11b   :  { %v162_v41 = vadd.f32 %v212_v36, %v154_v40 }
 0x11c   :  { %v136_v42 = vpop.f32.mrf.mxu2 }
 0x11d   :  { %v144_v43 = vadd.f32 %v136_v42, %v90_v39  ;;  %166 = vst.msk [vmem:[#allocation3 + $0x8] sm:$0xff] %vm25_vm0, %v162_v41 }
 0x11f   :  { %148 = vst.msk [vmem:[#allocation2 + $0x10] sm:$0xff] %vm25_vm0, %v144_v43 }
 0x124   :  { %v139_v45 = vpop.f32.mrf.mxu2 }
 0x125   :  { %v145_v46 = vadd.f32 %v139_v45, %v91_v44 }
 0x126   :  { %v155_v47 = vld [vmem:[#allocation2 + $0x10] sm:$0xff] }
 0x127   :  { %149 = vst.msk [vmem:[#allocation2 + $0x18] sm:$0xff] %vm25_vm0, %v145_v46  ;;  %v163_v48 = vadd.f32 %v212_v36, %v155_v47 }
 0x129   :  { %167 = vst.msk [vmem:[#allocation3 + $0x10] sm:$0xff] %vm25_vm0, %v163_v48 }
 0x12e   :  { %v156_v49 = vld [vmem:[#allocation2 + $0x18] sm:$0xff] }
 0x12f   :  { %v164_v50 = vadd.f32 %v212_v36, %v156_v49 }
 0x131   :  { %168 = vst.msk [vmem:[#allocation3 + $0x18] sm:$0xff] %vm25_vm0, %v164_v50 }
 0x132   :  { %181 = dma.vmem_to_hbm [thread:$0]  %s174_s25, 512, %s176_s28, [#allocation4], %s241_s29, %s241_s29, %s242_s30  }
 0x133   :  { %237 = dma.done.wait [#allocation4], 512  }
 0x134   :  { %238 = vsyncadd [#allocation4], 4294966784 }
 0x135   :  { %186 = vsyncpa [#allocation4], 1 }

// kernel: tpu_custom_call.1
= control target key start
LH: loop header
LB: loop body
LE: loop exit
PB: predicated region body
PF: predicated region fallthrough
CT: control target
= control target key end

     0   :  { %vm25_vm0 = vcmask 261120   ;;  %s346_s0 = inlined_call_operand.vmem [shape: f32[32,32], index: 0, kind: input, shape index: {}]   ;;  %s347_s1 = inlined_call_operand.vmem [shape: f32[32,64], index: 1, kind: input, shape index: {}]   ;;  %s348_s2 = inlined_call_operand.vmem [shape: f32[1,64], index: 2, kind: input, shape index: {}]   ;;  %s349_s3 = inlined_call_operand.vmem [shape: f32[64,32], index: 3, kind: input, shape index: {}]   ;;  %s350_s4 = inlined_call_operand.vmem [shape: f32[1,32], index: 4, kind: input, shape index: {}]   ;;  %s351_s5 = inlined_call_operand.hbm [shape: f32[32,32], index: 5, kind: output, shape index: {}]  }
   0x1   :  { %v37_v0 = vld [vmem:[%s347_s1 + $0x18] sm:$0xff]  ;;  %v36_v1 = vld [vmem:[%s347_s1 + $0x10] sm:$0xff]  ;;  %v35_v2 = vld [vmem:[%s347_s1 + $0x8] sm:$0xff] }
   0x2   :  { %67 = vmatpush.msra.mxu0 %v37_v0  ;;  %195 = vmatpush.msra.mxu3 %v37_v0  ;;  %v99_v3 = vld [vmem:[%s349_s3 + $0x38] sm:$0xff]  ;;  %v98_v4 = vld [vmem:[%s349_s3 + $0x30] sm:$0xff]  ;;  %v34_v5 = vld [vmem:[%s347_s1] sm:$0xff] }
   0x3   :  { %v30_v6 = vld [vmem:[%s346_s0] sm:$0xff]  ;;  %121 = vmatpush.msra.mxu1 %v99_v3  ;;  %199 = vmatpush.msra.mxu2 %v99_v3  ;;  %v31_v7 = vld [vmem:[%s346_s0 + $0x8] sm:$0xff] }
   0x4   :  { %68 = vmatpush.msra.mxu0 %v36_v1  ;;  %196 = vmatpush.msra.mxu3 %v36_v1 }
   0x6   :  { %69 = vmatpush.msra.mxu0 %v35_v2  ;;  %197 = vmatpush.msra.mxu3 %v35_v2 }
   0x7   :  { %10 = vsyncpa [#allocation4], 0  ;;  %122 = vmatpush.msra.mxu1 %v98_v4  ;;  %v97_v8 = vld [vmem:[%s349_s3 + $0x28] sm:$0xff]  ;;  %200 = vmatpush.msra.mxu2 %v98_v4  ;;  %v96_v9 = vld [vmem:[%s349_s3 + $0x20] sm:$0xff]  ;;  %v239_v16 = vmov 0.0   ;;  %vm100_vm1 = vcmask 523264  }
   0x8   :  { %70 = vmatpush.msra.mxu0 %v34_v5  ;;  %198 = vmatpush.msra.mxu3 %v34_v5  ;;  %v95_v10 = vld [vmem:[%s349_s3 + $0x18] sm:$0xff]  ;;  %v32_v11 = vld [vmem:[%s346_s0 + $0x10] sm:$0xff]  ;;  %v93_v14 = vld [vmem:[%s349_s3 + $0x8] sm:$0xff]  ;;  %26 = vst.msk [vmem:[#allocation2] sm:$0xff] %vm25_vm0, %v239_v16  ;;  %s175_s28 = sshll.u32 %s351_s5, 4  ;;  %s241_s29 = smov 128   ;;  %s176_s28 = int_to_ptr.hbm [resolvable:$true] %s175_s28 }
   0x9   :  { %187 = vmatmul.msk.f32.vlgmr.msra.gmra.mxu0 %vm25_vm0, %v30_v6  ;;  %188 = vmatmul.msk.f32.vlgmr.msra.gmra.mxu3 %vm25_vm0, %v31_v7  ;;  %v33_v12 = vld [vmem:[%s346_s0 + $0x18] sm:$0xff]  ;;  %v94_v13 = vld [vmem:[%s349_s3 + $0x10] sm:$0xff]  ;;  %v92_v15 = vld [vmem:[%s349_s3] sm:$0xff]  ;;  %27 = vst.msk [vmem:[#allocation2 + $0x8] sm:$0xff] %vm25_vm0, %v239_v16  ;;  %s242_s30 = smov 8  }
   0xa   :  { %123 = vmatpush.msra.mxu1 %v97_v8  ;;  %201 = vmatpush.msra.mxu2 %v97_v8  ;;  %v211_v17 = vld [vmem:[%s348_s2] ss:$0 sm:$0xff]  ;;  %28 = vst.msk [vmem:[#allocation2 + $0x10] sm:$0xff] %vm25_vm0, %v239_v16 }
   0xb   :  { %29 = vst.msk [vmem:[#allocation2 + $0x18] sm:$0xff] %vm25_vm0, %v239_v16  ;;  %v212_v36 = vld [vmem:[%s350_s4] ss:$0 sm:$0xff]  ;;  %s240_s4 = smov [#allocation3]  }
   0xc   :  { %124 = vmatpush.msra.mxu1 %v96_v9  ;;  %202 = vmatpush.msra.mxu2 %v96_v9  ;;  %s173_s25 = sshll.u32 %s240_s4, 4  ;;  %s174_s25 = int_to_ptr.vmem [resolvable:$true] %s173_s25 }
   0xe   :  { %125 = vmatpush.msra.mxu1 %v95_v10  ;;  %203 = vmatpush.msra.mxu2 %v95_v10 }
   0xf   :  { %v88_v30 = vld [vmem:[#allocation2] sm:$0xff] }
  0x10   :  { %126 = vmatpush.msra.mxu1 %v94_v13  ;;  %204 = vmatpush.msra.mxu2 %v94_v13  ;;  %v89_v33 = vld [vmem:[#allocation2 + $0x8] sm:$0xff] }
  0x11   :  { %189 = vmatmul.msk.f32.gmra.mxu3 %vm25_vm0, %v32_v11  ;;  %v90_v39 = vld [vmem:[#allocation2 + $0x10] sm:$0xff] }
  0x12   :  { %127 = vmatpush.msra.mxu1 %v93_v14  ;;  %205 = vmatpush.msra.mxu2 %v93_v14  ;;  %v91_v44 = vld [vmem:[#allocation2 + $0x18] sm:$0xff] }
  0x14   :  { %128 = vmatpush.msra.mxu1 %v92_v15  ;;  %206 = vmatpush.msra.mxu2 %v92_v15 }
  0x19   :  { %190 = vmatmul.msk.f32.gmra.mxu3 %vm25_vm0, %v33_v12 }
  0x86   :  { %v72_v18 = vpop.f32.mrf.mxu0 }
  0x87   :  { %v73_v19 = vadd.f32 %v211_v17, %v72_v18 }
  0x89   :  { %v84_v20 = vmax.f32 %v73_v19, 0.0 }
  0x8b   :  { %191 = vmatmul.msk.f32.vlgmr.msra.gmra.mxu1 %vm100_vm1, %v84_v20 }
  0x8c   :  { %v75_v21 = vpop.f32.mrf.mxu3 }
  0x8d   :  { %v76_v22 = vadd.f32 %v211_v17, %v75_v21 }
  0x8f   :  { %v85_v23 = vmax.f32 %v76_v22, 0.0 }
  0x93   :  { %192 = vmatmul.msk.f32.gmra.mxu1 %vm100_vm1, %v85_v23 }
  0x94   :  { %v78_v24 = vpop.f32.mrf.mxu3 }
  0x95   :  { %v79_v25 = vadd.f32 %v211_v17, %v78_v24 }
  0x97   :  { %v86_v26 = vmax.f32 %v79_v25, 0.0 }
  0x99   :  { %193 = vmatmul.msk.f32.vlgmr.msra.gmra.mxu2 %vm100_vm1, %v86_v26 }
  0x9c   :  { %v81_v27 = vpop.f32.mrf.mxu3 }
  0x9d   :  { %v82_v28 = vadd.f32 %v211_v17, %v81_v27 }
  0x9f   :  { %v87_v29 = vmax.f32 %v82_v28, 0.0 }
  0xa1   :  { %194 = vmatmul.msk.f32.gmra.mxu2 %vm100_vm1, %v87_v29 }
 0x108   :  { %v130_v31 = vpop.f32.mrf.mxu1 }
 0x109   :  { %v142_v32 = vadd.f32 %v130_v31, %v88_v30 }
 0x10b   :  { %146 = vst.msk [vmem:[#allocation2] sm:$0xff] %vm25_vm0, %v142_v32 }
 0x110   :  { %v133_v34 = vpop.f32.mrf.mxu1 }
 0x111   :  { %v143_v35 = vadd.f32 %v133_v34, %v89_v33 }
 0x112   :  { %v153_v37 = vld [vmem:[#allocation2] sm:$0xff] }
 0x113   :  { %147 = vst.msk [vmem:[#allocation2 + $0x8] sm:$0xff] %vm25_vm0, %v143_v35  ;;  %v161_v38 = vadd.f32 %v212_v36, %v153_v37 }
 0x115   :  { %165 = vst.msk [vmem:[#allocation3] sm:$0xff] %vm25_vm0, %v161_v38 }
 0x11a   :  { %v154_v40 = vld [vmem:[#allocation2 + $0x8] sm:$0xff] }
 0x11b   :  { %v162_v41 = vadd.f32 %v212_v36, %v154_v40 }
 0x11c   :  { %v136_v42 = vpop.f32.mrf.mxu2 }
 0x11d   :  { %v144_v43 = vadd.f32 %v136_v42, %v90_v39  ;;  %166 = vst.msk [vmem:[#allocation3 + $0x8] sm:$0xff] %vm25_vm0, %v162_v41 }
 0x11f   :  { %148 = vst.msk [vmem:[#allocation2 + $0x10] sm:$0xff] %vm25_vm0, %v144_v43 }
 0x124   :  { %v139_v45 = vpop.f32.mrf.mxu2 }
 0x125   :  { %v145_v46 = vadd.f32 %v139_v45, %v91_v44 }
 0x126   :  { %v155_v47 = vld [vmem:[#allocation2 + $0x10] sm:$0xff] }
 0x127   :  { %149 = vst.msk [vmem:[#allocation2 + $0x18] sm:$0xff] %vm25_vm0, %v145_v46  ;;  %v163_v48 = vadd.f32 %v212_v36, %v155_v47 }
 0x129   :  { %167 = vst.msk [vmem:[#allocation3 + $0x10] sm:$0xff] %vm25_vm0, %v163_v48 }
 0x12e   :  { %v156_v49 = vld [vmem:[#allocation2 + $0x18] sm:$0xff] }
 0x12f   :  { %v164_v50 = vadd.f32 %v212_v36, %v156_v49 }
 0x131   :  { %168 = vst.msk [vmem:[#allocation3 + $0x18] sm:$0xff] %vm25_vm0, %v164_v50 }
 0x132   :  { %181 = dma.vmem_to_hbm [thread:$0]  %s174_s25, 512, %s176_s28, [#allocation4], %s241_s29, %s241_s29, %s242_s30  }
 0x133   :  { %237 = dma.done.wait [#allocation4], 512  }
 0x134   :  { %238 = vsyncadd [#allocation4], 4294966784 }
 0x135   :  { %186 = vsyncpa [#allocation4], 1 }

</bundles_post_ra>
